<compile_context>
chip_gen: v6e
topology: v6e:2x2x1
jax: 0.10.0
libtpu: 0.0.40
codegen_flags: <defaults>
</compile_context>

<pallas_src>
import math

import jax
import jax.numpy as jnp
from jax.experimental import pallas as pl
from jax.experimental.pallas import tpu as pltpu


def _identity_copy_kernel(x_ref, o_ref):
    # Pure lane-dense 2D copy; the flatten happened (for free) in the wrapper.
    o_ref[...] = x_ref[...]


def _materialized_copy(x2, *, max_tile_bytes, lane_max, donate):
    """Run the lane-dense identity-copy kernel on the already-flattened x2."""
    n, flat = x2.shape
    itemsize = x2.dtype.itemsize
    total = n * flat
    # Minimum row tile = dtype sublane pack (8 rows f32, 16 bf16, 32 int8/fp8).
    min_rows = max(8, 32 // itemsize)

    # Lane-dense re-factorization: copy as (M, L) with L a multiple of 128.
    if total % 128 == 0:
        lane = 128
        while lane * 2 <= lane_max and total % (lane * 2) == 0:
            lane *= 2
        view = jnp.reshape(x2, (total // lane, lane))
    else:
        view = x2
    m, l_full = view.shape

    # Lane tile: multiple of 128 when possible, otherwise the full last dim
    # (always a legal block shape) as long as it fits the tile budget.
    if l_full % 128 == 0:
        tl = min(l_full, lane_max)
    elif l_full < 128 or min_rows * l_full * itemsize <= max_tile_bytes:
        tl = l_full
    else:
        tl = min(lane_max,
                 max(128, (max_tile_bytes // (min_rows * itemsize)) // 128 * 128))

    # Row tile: fit the ~max_tile_bytes budget; keep >= 2 grid steps on the
    # row axis when the row count allows it (v7x has 2 TensorCores per chip).
    tb = min(m, max(1, max_tile_bytes // (tl * itemsize)))
    if m >= 2 * min_rows:
        tb = min(tb, max(min_rows, (m // 2) // min_rows * min_rows))
    if tb < m:
        tb = max(min_rows, tb // min_rows * min_rows)

    grid = (pl.cdiv(m, tb), pl.cdiv(l_full, tl))
    out = pl.pallas_call(
        _identity_copy_kernel,
        out_shape=jax.ShapeDtypeStruct((m, l_full), view.dtype),
        grid=grid,
        in_specs=[pl.BlockSpec((tb, tl), lambda i, j: (i, j))],
        out_specs=pl.BlockSpec((tb, tl), lambda i, j: (i, j)),
        compiler_params=pltpu.CompilerParams(
            dimension_semantics=("parallel", "parallel"),
        ),
        input_output_aliases={0: 0} if donate else {},
    )(view)
    return jnp.reshape(out, (n, flat))


def flatten_layer(x, *, materialize=False, donate=False,
                  max_tile_bytes=2 * 1024 * 1024, lane_max=8192):
    """Pallas equivalent of torch FlattenLayer: x.view(x.shape[0], -1).

    Default path: metadata-only reshape (identical to torch's .view, free).
    materialize=True: force an explicit HBM materialization via the Pallas
    identity-copy kernel (fusion-anchor use only).
    """
    n = x.shape[0]
    flat = math.prod(x.shape[1:]) if x.ndim > 1 else 1
    x2 = jnp.reshape(x, (n, flat))
    if not materialize or n == 0 or flat == 0:
        return x2
    return _materialized_copy(x2, max_tile_bytes=max_tile_bytes,
                              lane_max=lane_max, donate=donate)


if __name__ == "__main__":
    key = jax.random.PRNGKey(0)
    # NCHW conv feature map: (N=2, C=4, H=16, W=16).
    x = jax.random.normal(key, (2, 4, 16, 16), dtype=jnp.float32)
    ref = jnp.reshape(x, (x.shape[0], -1))

    # Common path: metadata-only reshape, no kernel.
    out_fast = flatten_layer(x)
    # Explicit materialization path: runs the Pallas identity-copy kernel
    # (lane-dense (M, 2048) factorization for this input).
    out_mat = flatten_layer(x, materialize=True)

    # Exercise the non-128-divisible fallback path (flat = 3*5*7 = 105).
    x_odd = jax.random.normal(jax.random.PRNGKey(1), (2, 3, 5, 7), jnp.float32)
    out_odd = flatten_layer(x_odd, materialize=True)

    jax.block_until_ready((out_fast, out_mat, out_odd))

    assert out_fast.shape == ref.shape and out_fast.dtype == ref.dtype
    assert out_mat.shape == ref.shape and out_mat.dtype == ref.dtype
    assert jnp.array_equal(out_fast, ref)
    assert jnp.array_equal(out_mat, ref)
    assert jnp.array_equal(out_odd, jnp.reshape(x_odd, (x_odd.shape[0], -1)))

    print("KERNEL_OK")
</pallas_src>

<mosaic_0001>
module attributes {stable_mosaic.version = 11 : i64} {
  func.func @_identity_copy_kernel(%arg0: i32, %arg1: i32, %arg2: memref<1x2048xf32, #tpu.memory_space<vmem>>, %arg3: memref<1x2048xf32, #tpu.memory_space<vmem>>) attributes {dimension_semantics = [#tpu.dimension_semantics<parallel>, #tpu.dimension_semantics<parallel>], iteration_bounds = array<i64: 1, 1>, scalar_prefetch = 0 : i64, scratch_operands = 0 : i64, tpu.core_type = #tpu.core_type<tc>, window_params = [{transform_indices = @transform_0, window_bounds = array<i64: 1, 2048>}, {transform_indices = @transform_1, window_bounds = array<i64: 1, 2048>}]} {
    %c0 = arith.constant 0 : index
    %c0_0 = arith.constant 0 : index
    %0 = vector.load %arg2[%c0, %c0_0] : memref<1x2048xf32, #tpu.memory_space<vmem>>, vector<1x2048xf32>
    %c0_1 = arith.constant 0 : index
    %c0_2 = arith.constant 0 : index
    %1 = vector.load %arg3[%c0_1, %c0_2] : memref<1x2048xf32, #tpu.memory_space<vmem>>, vector<1x2048xf32>
    tpu.vector_store %arg3[%c0_1, %c0_2], %0 {strides = array<i32>} : memref<1x2048xf32, #tpu.memory_space<vmem>>, vector<1x2048xf32>,
    return
  }
  func.func @transform_0(%arg0: i32, %arg1: i32) -> (i32, i32) {
    %c0_i32 = arith.constant 0 : i32
    return %arg0, %arg1 : i32, i32
  }
  func.func @transform_1(%arg0: i32, %arg1: i32) -> (i32, i32) {
    %c0_i32 = arith.constant 0 : i32
    return %arg0, %arg1 : i32, i32
  }
}

</mosaic_0001>

<bundles_post_ra>
// kernel: tpu_custom_call.1
= control target key start
LH: loop header
LB: loop body
LE: loop exit
PB: predicated region body
PF: predicated region fallthrough
CT: control target
= control target key end

     0   :  { %6 = vsyncpa [#allocation3], 0  ;;  %s104_s0 = inlined_call_operand.hbm [shape: f32[1,2048], index: 0, kind: input, shape index: {}]   ;;  %s105_s1 = inlined_call_operand.hbm [shape: f32[1,2048], index: 1, kind: output, shape index: {}]  }
   0x1   :  { %7 = vsyncpa [#allocation4], 0  ;;  %s86_s6 = smov [#allocation2]  }
   0x2   :  { %s14_s7 = sshll.u32 %s86_s6, 4  ;;  %s15_s7 = int_to_ptr.vmem [resolvable:$true] %s14_s7 }
   0x3   :  { %s50_s8 = scalar_lea.vmem %s15_s7, 256  ;;  %p55_p1 = scmp.lt.s32.totalorder %s15_s7, %s15_s7 }
   0x4   :  { %p51_p0 = scmp.ne.s32.totalorder %s15_s7, %s50_s8  ;;  %p56_p2 = scmp.lt.s32.totalorder %s50_s8, %s50_s8 }
   0x6   :  { %p57_p3 = por %p56_p2, %p55_p1 }
   0x8   :  { %p58_p4 = pnand %p57_p3, %p51_p0 }
   0xa   :  { %61 = shalt.err (!%p58_p4)
}
   0xb   :  { %17 = dma.hbm_to_vmem [thread:$0]  %s104_s0, 256, %s15_s7, [#allocation3]  }
   0xc   :  { %82 = dma.done.wait [#allocation3], 256  }
   0xd   :  { %83 = vsyncadd [#allocation3], 4294967040  ;;  %s87_s11 = smov [#allocation5]   ;;  %v21_v0 = vld [vmem:[#allocation2] sm:$0xff]  ;;  %v22_v1 = vld [vmem:[#allocation2 + $0x8] sm:$0xff] }
   0xe   :  { %s31_s12 = sshll.u32 %s87_s11, 4  ;;  %23 = vst [vmem:[#allocation5] sm:$0xff] %v21_v0  ;;  %24 = vst [vmem:[#allocation5 + $0x8] sm:$0xff] %v22_v1  ;;  %s32_s12 = int_to_ptr.vmem [resolvable:$true] %s31_s12 }
   0xf   :  { %s62_s13 = scalar_lea.vmem %s32_s12, 256  ;;  %p67_p6 = scmp.lt.s32.totalorder %s32_s12, %s32_s12 }
  0x10   :  { %p63_p5 = scmp.ne.s32.totalorder %s32_s12, %s62_s13  ;;  %p68_p7 = scmp.lt.s32.totalorder %s62_s13, %s62_s13 }
  0x12   :  { %p69_p8 = por %p68_p7, %p67_p6 }
  0x14   :  { %p70_p9 = pnand %p69_p8, %p63_p5 }
  0x16   :  { %73 = shalt.err (!%p70_p9)
}
  0x17   :  { %34 = dma.vmem_to_hbm [thread:$0]  %s32_s12, 256, %s105_s1, [#allocation4]  }
  0x18   :  { %84 = dma.done.wait [#allocation4], 256  }
  0x19   :  { %85 = vsyncadd [#allocation4], 4294967040 }
  0x1a   :  { %38 = vsyncpa [#allocation3], 1 }
  0x1b   :  { %39 = vsyncpa [#allocation4], 1 }

</bundles_post_ra>
